<compile_context>
chip_gen: v7x
topology: tpu7x:2x2x1
jax: 0.10.0
libtpu: 0.0.40
codegen_flags: <defaults>
</compile_context>

<pallas_src>
import functools

import jax
import jax.numpy as jnp
from jax.experimental import pallas as pl
from jax.experimental.pallas import tpu as pltpu


# ---------------------------------------------------------------------------
# helpers
# ---------------------------------------------------------------------------
def _round_up(x, m):
    return (x + m - 1) // m * m


def _pad2(x, rows, cols):
    return jnp.pad(x, ((0, rows - x.shape[0]), (0, cols - x.shape[1])))


def _pick_tile(n, candidates):
    for t in candidates:
        if n % t == 0:
            return t
    return n


def _prepare(adj, x, params):
    """Pad to 128-multiples, cast MXU inputs to bf16, stack [W_self; W_neigh]."""
    n = adj.shape[0]
    n_p = _round_up(n, 128)
    dims = [x.shape[1]] + [ws.shape[1] for (ws, _, _) in params]
    dims_p = [_round_up(d, 128) for d in dims]

    adj_p = _pad2(adj, n_p, n_p).astype(jnp.bfloat16)
    x_p = _pad2(x, n_p, dims_p[0]).astype(jnp.bfloat16)

    layers = []
    for l, (ws, wn, b) in enumerate(params):
        din_p, dout_p = dims_p[l], dims_p[l + 1]
        # stacked [W_self; W_neigh] along the input-feature axis -> one matmul
        w_stack = jnp.concatenate(
            [_pad2(ws, din_p, dout_p), _pad2(wn, din_p, dout_p)], axis=0
        ).astype(jnp.bfloat16)
        b_p = jnp.pad(b, (0, dout_p - b.shape[0])).reshape(1, dout_p)
        layers.append((w_stack, b_p))
    return adj_p, x_p, layers, n_p, dims_p


# ---------------------------------------------------------------------------
# Path 1: fully fused 3-layer kernel (small graphs; no grid, all in VMEM)
# ---------------------------------------------------------------------------
def _fused3_kernel(a_ref, x_ref, w0_ref, b0_ref, w1_ref, b1_ref, w2_ref, b2_ref,
                   o_ref):
    a = a_ref[...]                       # (Np, Np) bf16, loaded once, reused 3x
    h = x_ref[...]                       # (Np, F0p) bf16

    def layer(h_bf, w_ref, b_ref, relu):
        # mean aggregation (isolated nodes already have all-zero rows in A)
        neigh = jnp.dot(a, h_bf, preferred_element_type=jnp.float32)
        # fused self+neighbor projection: one K = 2*Fin matmul
        hcat = jnp.concatenate([h_bf, neigh.astype(jnp.bfloat16)], axis=-1)
        out = jnp.dot(hcat, w_ref[...],
                      preferred_element_type=jnp.float32) + b_ref[...]
        if relu:
            out = jnp.maximum(out, 0.0)
        return out

    h1 = layer(h, w0_ref, b0_ref, True).astype(jnp.bfloat16)
    h2 = layer(h1, w1_ref, b1_ref, True).astype(jnp.bfloat16)
    h3 = layer(h2, w2_ref, b2_ref, False)
    o_ref[...] = h3.astype(o_ref.dtype)


def sage_forward_fused(adj, x, params):
    assert len(params) == 3
    n = adj.shape[0]
    n_classes = params[-1][0].shape[1]
    adj_p, x_p, layers, n_p, dims_p = _prepare(adj, x, params)

    ops = []
    for (w_stack, b_p) in layers:
        ops += [w_stack, b_p]

    out_p = pl.pallas_call(
        _fused3_kernel,
        out_shape=jax.ShapeDtypeStruct((n_p, dims_p[-1]), jnp.float32),
    )(adj_p, x_p, *ops)
    return out_p[:n, :n_classes]


# ---------------------------------------------------------------------------
# Path 2: general tiled per-layer kernel (scales with N; ONE kernel per layer)
# ---------------------------------------------------------------------------
def _sage_layer_kernel(a_ref, hk_ref, hi_ref, w_ref, b_ref, o_ref, acc_ref, *,
                       apply_relu):
    # acc_i = sum_k A[i,k] @ H[k]          (K-tiled f32 accumulator in VMEM)
    # out_i = concat([H_i, acc_i]) @ [Ws; Wn] + bias   (+ ReLU)
    k = pl.program_id(1)

    @pl.when(k == 0)
    def _():
        acc_ref[...] = jnp.zeros_like(acc_ref)

    acc_ref[...] += jnp.dot(a_ref[...], hk_ref[...],
                            preferred_element_type=jnp.float32)

    @pl.when(k == pl.num_programs(1) - 1)
    def _():
        hcat = jnp.concatenate(
            [hi_ref[...], acc_ref[...].astype(jnp.bfloat16)], axis=-1)
        out = jnp.dot(hcat, w_ref[...],
                      preferred_element_type=jnp.float32) + b_ref[...]
        if apply_relu:
            out = jnp.maximum(out, 0.0)
        o_ref[...] = out.astype(o_ref.dtype)


def sage_layer_tiled(adj_p, h_p, w_stack, bias_p, *, apply_relu, out_dtype):
    """One SAGEConv('mean') layer on padded/bf16 inputs.

    adj_p  : (Np, Np)            bf16  row-normalized adjacency
    h_p    : (Np, Din_p)         bf16
    w_stack: (2*Din_p, Dout_p)   bf16  = concat([W_self; W_neigh], axis=0)
    bias_p : (1, Dout_p)         f32
    """
    n_p, din_p = h_p.shape
    dout_p = w_stack.shape[1]

    tile_n = _pick_tile(n_p, (256, 128))
    tile_k = _pick_tile(n_p, (512, 256, 128))
    kernel = functools.partial(_sage_layer_kernel, apply_relu=apply_relu)

    out = pl.pallas_call(
        kernel,
        out_shape=jax.ShapeDtypeStruct((n_p, dout_p), out_dtype),
        grid_spec=pltpu.PrefetchScalarGridSpec(
            num_scalar_prefetch=0,
            grid=(n_p // tile_n, n_p // tile_k),
            in_specs=[
                pl.BlockSpec((tile_n, tile_k), lambda i, k: (i, k)),    # A tile
                pl.BlockSpec((tile_k, din_p), lambda i, k: (k, 0)),     # H[k]
                pl.BlockSpec((tile_n, din_p), lambda i, k: (i, 0)),     # H[i]
                pl.BlockSpec((2 * din_p, dout_p), lambda i, k: (0, 0)),  # W stack
                pl.BlockSpec((1, dout_p), lambda i, k: (0, 0)),         # bias
            ],
            out_specs=pl.BlockSpec((tile_n, dout_p), lambda i, k: (i, 0)),
            scratch_shapes=[pltpu.VMEM((tile_n, din_p), jnp.float32)],
        ),
        compiler_params=pltpu.CompilerParams(
            dimension_semantics=("parallel", "arbitrary")),
    )(adj_p, h_p, h_p, w_stack, bias_p)
    return out


def sage_forward_tiled(adj, x, params):
    n = adj.shape[0]
    n_classes = params[-1][0].shape[1]
    adj_p, h, layers, _, _ = _prepare(adj, x, params)
    n_layers = len(layers)
    out = None
    for l, (w_stack, b_p) in enumerate(layers):
        last = (l == n_layers - 1)
        out = sage_layer_tiled(
            adj_p, h, w_stack, b_p,
            apply_relu=not last,
            # intermediate activations stay bf16 -> half the HBM traffic
            out_dtype=jnp.float32 if last else jnp.bfloat16)
        h = out
    return out[:n, :n_classes].astype(jnp.float32)


def sage_forward(adj, x, params, *, fuse_layers=None):
    """3-layer SAGE forward (eval mode: dropout = identity)."""
    n_p = _round_up(adj.shape[0], 128)
    if fuse_layers is None:
        # A (bf16) resident in VMEM dominates the fused path's footprint.
        fuse_layers = (len(params) == 3) and (n_p * n_p * 2 <= 8 * 1024 * 1024)
    if fuse_layers and len(params) == 3:
        return sage_forward_fused(adj, x, params)
    return sage_forward_tiled(adj, x, params)


# ---------------------------------------------------------------------------
# setup / demo
# ---------------------------------------------------------------------------
def init_params(key, in_feats, n_hidden, n_classes):
    dims = [(in_feats, n_hidden), (n_hidden, n_hidden), (n_hidden, n_classes)]
    params = []
    for (din, dout) in dims:
        key, k1, k2 = jax.random.split(key, 3)
        scale = 1.0 / jnp.sqrt(jnp.float32(din))
        w_self = jax.random.uniform(k1, (din, dout), jnp.float32, -scale, scale)
        w_neigh = jax.random.uniform(k2, (din, dout), jnp.float32, -scale, scale)
        bias = jnp.zeros((dout,), jnp.float32)
        params.append((w_self, w_neigh, bias))
    return params


def build_graph(key, n_nodes, edge_prob=0.15):
    # Deterministic random directed graph; row-normalized adjacency for 'mean'.
    adj01 = jax.random.bernoulli(key, edge_prob,
                                 (n_nodes, n_nodes)).astype(jnp.float32)
    deg = jnp.sum(adj01, axis=1, keepdims=True)
    adj = adj01 / jnp.maximum(deg, 1.0)   # zero in-degree rows stay all-zero
    return adj


if __name__ == "__main__":
    N = 64          # number of nodes in the subgraph
    IN_FEATS = 32
    N_HIDDEN = 32
    N_CLASSES = 16

    root = jax.random.PRNGKey(0)
    k_graph, k_feat, k_param = jax.random.split(root, 3)

    adj = build_graph(k_graph, N)
    x = jax.random.normal(k_feat, (N, IN_FEATS), jnp.float32)
    params = init_params(k_param, IN_FEATS, N_HIDDEN, N_CLASSES)

    out_fused = jax.block_until_ready(
        sage_forward(adj, x, params, fuse_layers=True))
    out_tiled = jax.block_until_ready(
        sage_forward(adj, x, params, fuse_layers=False))

    # Pure-JAX f32 reference of the SAGE('mean') math.
    h_ref = x
    for l, (ws, wn, b) in enumerate(params):
        h_ref = h_ref @ ws + (adj @ h_ref) @ wn + b
        if l != len(params) - 1:
            h_ref = jnp.maximum(h_ref, 0.0)

    assert out_fused.shape == (N, N_CLASSES)
    assert out_tiled.shape == (N, N_CLASSES)
    # Tolerance loosened vs f32: kernels feed bf16 operands to the MXU
    # (f32 accumulation), so ~1e-2-scale deviations are expected.
    assert jnp.allclose(out_fused, h_ref, atol=1e-1, rtol=1e-1)
    assert jnp.allclose(out_tiled, h_ref, atol=1e-1, rtol=1e-1)

    print("KERNEL_OK")
</pallas_src>

<mosaic_0001>
module attributes {stable_mosaic.version = 11 : i64} {
  func.func @_fused3_kernel(%arg0: memref<128x128xbf16, #tpu.memory_space<vmem>>, %arg1: memref<128x128xbf16, #tpu.memory_space<vmem>>, %arg2: memref<256x128xbf16, #tpu.memory_space<vmem>>, %arg3: memref<1x128xf32, #tpu.memory_space<vmem>>, %arg4: memref<256x128xbf16, #tpu.memory_space<vmem>>, %arg5: memref<1x128xf32, #tpu.memory_space<vmem>>, %arg6: memref<256x128xbf16, #tpu.memory_space<vmem>>, %arg7: memref<1x128xf32, #tpu.memory_space<vmem>>, %arg8: memref<128x128xf32, #tpu.memory_space<vmem>>) attributes {dimension_semantics = [], scalar_prefetch = 0 : i64, scratch_operands = 0 : i64, tpu.core_type = #tpu.core_type<tc>} {
    %c0 = arith.constant 0 : index
    %c0_0 = arith.constant 0 : index
    %0 = vector.load %arg0[%c0, %c0_0] : memref<128x128xbf16, #tpu.memory_space<vmem>>, vector<128x128xbf16>
    %c0_1 = arith.constant 0 : index
    %c0_2 = arith.constant 0 : index
    %1 = vector.load %arg1[%c0_1, %c0_2] : memref<128x128xbf16, #tpu.memory_space<vmem>>, vector<128x128xbf16>
    %cst = arith.constant dense<0.000000e+00> : vector<128x128xf32>
    %2 = tpu.matmul %0, %1, %cst {dimension_numbers = #tpu.dot_dimension_numbers<[1], [0], [0], [1], [0, 0, 1, 1], [], []>} : vector<128x128xbf16>, vector<128x128xbf16>, vector<128x128xf32> -> vector<128x128xf32>
    %3 = arith.truncf %2 : vector<128x128xf32> to vector<128x128xbf16>
    %4 = tpu.concatenate %1, %3 in 1 : vector<128x128xbf16>, vector<128x128xbf16> -> vector<128x256xbf16>
    %c0_3 = arith.constant 0 : index
    %c0_4 = arith.constant 0 : index
    %5 = vector.load %arg2[%c0_3, %c0_4] : memref<256x128xbf16, #tpu.memory_space<vmem>>, vector<256x128xbf16>
    %cst_5 = arith.constant dense<0.000000e+00> : vector<128x128xf32>
    %6 = tpu.matmul %4, %5, %cst_5 {dimension_numbers = #tpu.dot_dimension_numbers<[1], [0], [0], [1], [0, 0, 1, 1], [], []>} : vector<128x256xbf16>, vector<256x128xbf16>, vector<128x128xf32> -> vector<128x128xf32>
    %c0_6 = arith.constant 0 : index
    %c0_7 = arith.constant 0 : index
    %7 = vector.load %arg3[%c0_6, %c0_7] : memref<1x128xf32, #tpu.memory_space<vmem>>, vector<1x128xf32>
    %8 = vector.broadcast %7 : vector<1x128xf32> to vector<128x128xf32>
    %9 = arith.addf %6, %8 : vector<128x128xf32>
    %cst_8 = arith.constant 0.000000e+00 : f32
    %10 = vector.broadcast %cst_8 : f32 to vector<128x128xf32>
    %11 = arith.maximumf %9, %10 : vector<128x128xf32>
    %12 = arith.truncf %11 : vector<128x128xf32> to vector<128x128xbf16>
    %cst_9 = arith.constant dense<0.000000e+00> : vector<128x128xf32>
    %13 = tpu.matmul %0, %12, %cst_9 {dimension_numbers = #tpu.dot_dimension_numbers<[1], [0], [0], [1], [0, 0, 1, 1], [], []>} : vector<128x128xbf16>, vector<128x128xbf16>, vector<128x128xf32> -> vector<128x128xf32>
    %14 = arith.truncf %13 : vector<128x128xf32> to vector<128x128xbf16>
    %15 = tpu.concatenate %12, %14 in 1 : vector<128x128xbf16>, vector<128x128xbf16> -> vector<128x256xbf16>
    %c0_10 = arith.constant 0 : index
    %c0_11 = arith.constant 0 : index
    %16 = vector.load %arg4[%c0_10, %c0_11] : memref<256x128xbf16, #tpu.memory_space<vmem>>, vector<256x128xbf16>
    %cst_12 = arith.constant dense<0.000000e+00> : vector<128x128xf32>
    %17 = tpu.matmul %15, %16, %cst_12 {dimension_numbers = #tpu.dot_dimension_numbers<[1], [0], [0], [1], [0, 0, 1, 1], [], []>} : vector<128x256xbf16>, vector<256x128xbf16>, vector<128x128xf32> -> vector<128x128xf32>
    %c0_13 = arith.constant 0 : index
    %c0_14 = arith.constant 0 : index
    %18 = vector.load %arg5[%c0_13, %c0_14] : memref<1x128xf32, #tpu.memory_space<vmem>>, vector<1x128xf32>
    %19 = vector.broadcast %18 : vector<1x128xf32> to vector<128x128xf32>
    %20 = arith.addf %17, %19 : vector<128x128xf32>
    %cst_15 = arith.constant 0.000000e+00 : f32
    %21 = vector.broadcast %cst_15 : f32 to vector<128x128xf32>
    %22 = arith.maximumf %20, %21 : vector<128x128xf32>
    %23 = arith.truncf %22 : vector<128x128xf32> to vector<128x128xbf16>
    %cst_16 = arith.constant dense<0.000000e+00> : vector<128x128xf32>
    %24 = tpu.matmul %0, %23, %cst_16 {dimension_numbers = #tpu.dot_dimension_numbers<[1], [0], [0], [1], [0, 0, 1, 1], [], []>} : vector<128x128xbf16>, vector<128x128xbf16>, vector<128x128xf32> -> vector<128x128xf32>
    %25 = arith.truncf %24 : vector<128x128xf32> to vector<128x128xbf16>
    %26 = tpu.concatenate %23, %25 in 1 : vector<128x128xbf16>, vector<128x128xbf16> -> vector<128x256xbf16>
    %c0_17 = arith.constant 0 : index
    %c0_18 = arith.constant 0 : index
    %27 = vector.load %arg6[%c0_17, %c0_18] : memref<256x128xbf16, #tpu.memory_space<vmem>>, vector<256x128xbf16>
    %cst_19 = arith.constant dense<0.000000e+00> : vector<128x128xf32>
    %28 = tpu.matmul %26, %27, %cst_19 {dimension_numbers = #tpu.dot_dimension_numbers<[1], [0], [0], [1], [0, 0, 1, 1], [], []>} : vector<128x256xbf16>, vector<256x128xbf16>, vector<128x128xf32> -> vector<128x128xf32>
    %c0_20 = arith.constant 0 : index
    %c0_21 = arith.constant 0 : index
    %29 = vector.load %arg7[%c0_20, %c0_21] : memref<1x128xf32, #tpu.memory_space<vmem>>, vector<1x128xf32>
    %30 = vector.broadcast %29 : vector<1x128xf32> to vector<128x128xf32>
    %31 = arith.addf %28, %30 : vector<128x128xf32>
    %c0_22 = arith.constant 0 : index
    %c0_23 = arith.constant 0 : index
    %32 = vector.load %arg8[%c0_22, %c0_23] : memref<128x128xf32, #tpu.memory_space<vmem>>, vector<128x128xf32>
    tpu.vector_store %arg8[%c0_22, %c0_23], %31 {strides = array<i32>} : memref<128x128xf32, #tpu.memory_space<vmem>>, vector<128x128xf32>,
    return
  }
}

</mosaic_0001>

<bundles_post_ra>
// kernel: tpu_custom_call.1
= control target key start
LH: loop header
LB: loop body
LE: loop exit
PB: predicated region body
PF: predicated region fallthrough
CT: control target
= control target key end

     0   :  { %13 = vsyncpa [#allocation3], 0  ;;  %s2385_s0 = inlined_call_operand.hbm [shape: bf16[128,128], index: 0, kind: input, shape index: {}]   ;;  %s2386_s1 = inlined_call_operand.hbm [shape: bf16[128,128], index: 1, kind: input, shape index: {}]   ;;  %s2387_s2 = inlined_call_operand.hbm [shape: bf16[256,128], index: 2, kind: input, shape index: {}]   ;;  %s2388_s3 = inlined_call_operand.vmem [shape: f32[1,128], index: 3, kind: input, shape index: {}]   ;;  %s2389_s4 = inlined_call_operand.hbm [shape: bf16[256,128], index: 4, kind: input, shape index: {}]   ;;  %s2390_s5 = inlined_call_operand.vmem [shape: f32[1,128], index: 5, kind: input, shape index: {}]   ;;  %s2391_s6 = inlined_call_operand.hbm [shape: bf16[256,128], index: 6, kind: input, shape index: {}]   ;;  %s2392_s7 = inlined_call_operand.vmem [shape: f32[1,128], index: 7, kind: input, shape index: {}]   ;;  %s2393_s8 = inlined_call_operand.hbm [shape: f32[128,128], index: 8, kind: output, shape index: {}]  }
   0x1   :  { %14 = vsyncpa [#allocation6], 0 }
   0x2   :  { %15 = vsyncpa [#allocation9], 0 }
   0x3   :  { %16 = vsyncpa [#allocation4], 0  ;;  %s1954_s27 = smov [#allocation5]   ;;  %s1955_s29 = smov [#allocation8]  }
   0x4   :  { %s34_s28 = sshll.u32 %s1954_s27, 4  ;;  %s60_s30 = sshll.u32 %s1955_s29, 4  ;;  %s35_s28 = int_to_ptr.vmem [resolvable:$true] %s34_s28  ;;  %s2009_s30 = int_to_ptr.vmem [resolvable:$true] %s60_s30 }
   0x5   :  { %s1814_s11 = scalar_lea.hbm %s2386_s1, 1024 }
   0x6   :  { %p1815_p0 = scmp.ne.s32.totalorder %s2386_s1, %s1814_s11  ;;  %p1818_p1 = scmp.lt.u32.totalorder %s1814_s11, %s2386_s1 }
   0x8   :  { %p1820_p2 = pnand %p1818_p1, %p1815_p0 }
   0xa   :  { %1823 = shalt.err (!%p1820_p2)
}
   0xb   :  { %s1824_s16 = scalar_lea.vmem %s35_s28, 1024  ;;  %p1829_p4 = scmp.lt.s32.totalorder %s35_s28, %s35_s28 }
   0xc   :  { %p1825_p3 = scmp.ne.s32.totalorder %s35_s28, %s1824_s16  ;;  %p1830_p5 = scmp.lt.s32.totalorder %s1824_s16, %s1824_s16 }
   0xe   :  { %p1831_p6 = por %p1830_p5, %p1829_p4 }
  0x10   :  { %p1832_p7 = pnand %p1831_p6, %p1825_p3 }
  0x12   :  { %1835 = shalt.err (!%p1832_p7)
}
  0x13   :  { %s1956_s17 = smov 64   ;;  %s1957_s18 = smov 4  }
  0x14   :  { %40 = dma.hbm_to_vmem [thread:$0]  %s2386_s1, 1024, %s35_s28, [#allocation6], %s1956_s17, %s1956_s17, %s1957_s18  }
  0x15   :  { %s1836_s23 = scalar_lea.hbm %s2389_s4, 2048 }
  0x16   :  { %p1837_p8 = scmp.ne.s32.totalorder %s2389_s4, %s1836_s23  ;;  %p1840_p9 = scmp.lt.u32.totalorder %s1836_s23, %s2389_s4 }
  0x18   :  { %p1842_p10 = pnand %p1840_p9, %p1837_p8 }
  0x1a   :  { %1845 = shalt.err (!%p1842_p10)
}
  0x1b   :  { %s1846_s29 = scalar_lea.vmem %s2009_s30, 2048  ;;  %p1851_p12 = scmp.lt.s32.totalorder %s2009_s30, %s2009_s30 }
  0x1c   :  { %p1847_p11 = scmp.ne.s32.totalorder %s2009_s30, %s1846_s29  ;;  %p1852_p13 = scmp.lt.s32.totalorder %s1846_s29, %s1846_s29 }
  0x1e   :  { %p1853_p0 = por %p1852_p13, %p1851_p12 }
  0x20   :  { %p1854_p1 = pnand %p1853_p0, %p1847_p11 }
  0x22   :  { %1857 = shalt.err (!%p1854_p1)
}
  0x23   :  { %66 = dma.hbm_to_vmem [thread:$0]  %s2389_s4, 2048, %s2009_s30, [#allocation9], %s1956_s17, %s1956_s17, %s1957_s18  }
  0x24   :  { %s1958_s9 = smov [#allocation2]   ;;  %s1959_s11 = smov [#allocation7]  }
  0x25   :  { %s22_s10 = sshll.u32 %s1958_s9, 4  ;;  %s46_s12 = sshll.u32 %s1959_s11, 4  ;;  %s23_s10 = int_to_ptr.vmem [resolvable:$true] %s22_s10  ;;  %s2046_s12 = int_to_ptr.vmem [resolvable:$true] %s46_s12 }
  0x26   :  { %s1858_s15 = scalar_lea.hbm %s2385_s0, 1024 }
  0x27   :  { %p1859_p2 = scmp.ne.s32.totalorder %s2385_s0, %s1858_s15  ;;  %p1862_p3 = scmp.lt.u32.totalorder %s1858_s15, %s2385_s0 }
  0x29   :  { %p1864_p4 = pnand %p1862_p3, %p1859_p2 }
  0x2b   :  { %1867 = shalt.err (!%p1864_p4)
}
  0x2c   :  { %s1868_s4 = scalar_lea.vmem %s23_s10, 1024  ;;  %p1873_p6 = scmp.lt.s32.totalorder %s23_s10, %s23_s10 }
  0x2d   :  { %p1869_p5 = scmp.ne.s32.totalorder %s23_s10, %s1868_s4  ;;  %p1874_p7 = scmp.lt.s32.totalorder %s1868_s4, %s1868_s4 }
  0x2f   :  { %p1875_p8 = por %p1874_p7, %p1873_p6 }
  0x31   :  { %p1876_p9 = pnand %p1875_p8, %p1869_p5 }
  0x33   :  { %1879 = shalt.err (!%p1876_p9)
}
  0x34   :  { %28 = dma.hbm_to_vmem [thread:$0]  %s2385_s0, 1024, %s23_s10, [#allocation3], %s1956_s17, %s1956_s17, %s1957_s18  }
  0x35   :  { %s1880_s25 = scalar_lea.hbm %s2387_s2, 2048 }
  0x36   :  { %p1881_p10 = scmp.ne.s32.totalorder %s2387_s2, %s1880_s25  ;;  %p1884_p11 = scmp.lt.u32.totalorder %s1880_s25, %s2387_s2 }
  0x38   :  { %p1886_p12 = pnand %p1884_p11, %p1881_p10 }
  0x3a   :  { %1889 = shalt.err (!%p1886_p12)
}
  0x3b   :  { %s1890_s28 = scalar_lea.vmem %s2046_s12, 2048  ;;  %p1895_p0 = scmp.lt.s32.totalorder %s2046_s12, %s2046_s12 }
  0x3c   :  { %p1891_p13 = scmp.ne.s32.totalorder %s2046_s12, %s1890_s28  ;;  %p1896_p1 = scmp.lt.s32.totalorder %s1890_s28, %s1890_s28 }
  0x3e   :  { %p1897_p2 = por %p1896_p1, %p1895_p0 }
  0x40   :  { %p1898_p3 = pnand %p1897_p2, %p1891_p13 }
  0x42   :  { %1901 = shalt.err (!%p1898_p3)
}
  0x43   :  { %52 = dma.hbm_to_vmem [thread:$0]  %s2387_s2, 2048, %s2046_s12, [#allocation6], %s1956_s17, %s1956_s17, %s1957_s18  }
  0x44   :  { %s1960_s10 = smov [#allocation10]   ;;  %s1902_s15 = scalar_lea.hbm %s2391_s6, 2048 }
  0x45   :  { %s74_s11 = sshll.u32 %s1960_s10, 4  ;;  %p1903_p4 = scmp.ne.s32.totalorder %s2391_s6, %s1902_s15  ;;  %s75_s11 = int_to_ptr.vmem [resolvable:$true] %s74_s11 }
  0x46   :  { %p1906_p5 = scmp.lt.u32.totalorder %s1902_s15, %s2391_s6 }
  0x48   :  { %p1908_p6 = pnand %p1906_p5, %p1903_p4 }
  0x4a   :  { %1911 = shalt.err (!%p1908_p6)
}
  0x4b   :  { %s1912_s4 = scalar_lea.vmem %s75_s11, 2048  ;;  %p1917_p8 = scmp.lt.s32.totalorder %s75_s11, %s75_s11 }
  0x4c   :  { %p1913_p7 = scmp.ne.s32.totalorder %s75_s11, %s1912_s4  ;;  %p1918_p9 = scmp.lt.s32.totalorder %s1912_s4, %s1912_s4 }
  0x4e   :  { %p1919_p10 = por %p1918_p9, %p1917_p8 }
  0x50   :  { %p1920_p11 = pnand %p1919_p10, %p1913_p7 }
  0x52   :  { %1923 = shalt.err (!%p1920_p11)
}
  0x53   :  { %80 = dma.hbm_to_vmem [thread:$0]  %s2391_s6, 2048, %s75_s11, [#allocation9], %s1956_s17, %s1956_s17, %s1957_s18  }
  0x54   :  { %1946 = dma.done.wait [#allocation3], 1024  }
  0x55   :  { %1947 = vsyncadd [#allocation3], 4294966272 }
  0x56   :  { %1948 = dma.done.wait [#allocation6], 3072  }
  0x57   :  { %1949 = vsyncadd [#allocation6], 4294964224 }
  0x58   :  { %1950 = dma.done.wait [#allocation9], 4096  }
  0x59   :  { %1951 = vsyncadd [#allocation9], 4294963200  ;;  %v2098_v0 = vld [vmem:[#allocation5] sm:$0xff]   ;;  %v2100_v1 = vld [vmem:[#allocation5 + $0x8] sm:$0xff]  }
  0x5a   :  { %1628 = vmatprep.subr.bf16.mxu0 %v2098_v0  ;;  %v2105_v2 = vld [vmem:[#allocation5 + $0x10] sm:$0xff]   ;;  %v2108_v3 = vld [vmem:[#allocation5 + $0x18] sm:$0xff]   ;;  %v2111_v4 = vld [vmem:[#allocation2] sm:$0xff]  }
  0x5b   :  { %1629 = vmatpush3.bf16.msra.mxu0 %v2098_v0  ;;  %1644 = vmatprep.mubr.bf16.mxu0 %v2111_v4  ;;  %v2116_v5 = vld [vmem:[#allocation5 + $0x20] sm:$0xff]   ;;  %v2119_v6 = vld [vmem:[#allocation5 + $0x28] sm:$0xff]   ;;  %v2122_v9 = vld [vmem:[#allocation5 + $0x30] sm:$0xff]  }
  0x5c   :  { %1630 = vmatprep.subr.bf16.mxu0 %v2100_v1  ;;  %v1766_v7 = vld [vmem:[#allocation7 + $0x40] sm:$0xff]   ;;  %v1768_v10 = vld [vmem:[#allocation7 + $0x48] sm:$0xff]   ;;  %v1770_v12 = vld [vmem:[#allocation7 + $0x50] sm:$0xff]  }
  0x5d   :  { %v1767_v8 = vld [vmem:[#allocation7] sm:$0xff]   ;;  %1404 = vmatprep.subr.bf16.mxu1 %v1766_v7  ;;  %v1769_v11 = vld [vmem:[#allocation7 + $0x8] sm:$0xff]   ;;  %v2126_v13 = vld [vmem:[#allocation5 + $0x38] sm:$0xff]  }
  0x5e   :  { %1405 = vmatpush3.bf16.msra.mxu1 %v1767_v8  ;;  %v1771_v14 = vld [vmem:[#allocation7 + $0x10] sm:$0xff]   ;;  %v1772_v15 = vld [vmem:[#allocation7 + $0x58] sm:$0xff]   ;;  %v2132_v17 = vld [vmem:[#allocation2 + $0x8] sm:$0xff]  }
  0x5f   :  { %1631 = vmatpush3.bf16.msra.mxu0 %v2100_v1  ;;  %1406 = vmatprep.subr.bf16.mxu1 %v1768_v10  ;;  %v1773_v16 = vld [vmem:[#allocation7 + $0x18] sm:$0xff]   ;;  %v1774_v18 = vld [vmem:[#allocation7 + $0x60] sm:$0xff]   ;;  %v2134_v19 = vld [vmem:[#allocation2 + $0x10] sm:$0xff]  }
  0x60   :  { %1632 = vmatprep.subr.bf16.mxu0 %v2105_v2  ;;  %v1775_v20 = vld [vmem:[#allocation7 + $0x20] sm:$0xff]   ;;  %v1776_v21 = vld [vmem:[#allocation7 + $0x68] sm:$0xff]   ;;  %v1778_v23 = vld [vmem:[#allocation7 + $0x70] sm:$0xff]  }
  0x61   :  { %v1777_v22 = vld [vmem:[#allocation7 + $0x28] sm:$0xff]   ;;  %v2139_v24 = vld [vmem:[#allocation2 + $0x18] sm:$0xff]   ;;  %v2141_v25 = vld [vmem:[#allocation2 + $0x20] sm:$0xff]  }
  0x62   :  { %1407 = vmatpush3.bf16.msra.mxu1 %v1769_v11  ;;  %v2145_v26 = vld [vmem:[#allocation2 + $0x28] sm:$0xff]   ;;  %v2147_v27 = vld [vmem:[#allocation2 + $0x30] sm:$0xff]   ;;  %v2151_v28 = vld [vmem:[#allocation2 + $0x38] sm:$0xff]  }
  0x63   :  { %1633 = vmatpush3.bf16.msra.mxu0 %v2105_v2  ;;  %1408 = vmatprep.subr.bf16.mxu1 %v1770_v12  ;;  %v1779_v29 = vld [vmem:[#allocation7 + $0x30] sm:$0xff]   ;;  %v1780_v30 = vld [vmem:[#allocation7 + $0x78] sm:$0xff]   ;;  %v2167_v57 = vld [vmem:[%s2388_s3] ss:$0 sm:$0xff] }
  0x64   :  { %1634 = vmatprep.subr.bf16.mxu0 %v2108_v3  ;;  %v1781_v31 = vld [vmem:[#allocation7 + $0x38] sm:$0xff]  }
  0x66   :  { %1409 = vmatpush3.bf16.msra.mxu1 %v1771_v14 }
  0x67   :  { %1635 = vmatpush3.bf16.msra.mxu0 %v2108_v3  ;;  %1410 = vmatprep.subr.bf16.mxu1 %v1772_v15 }
  0x68   :  { %1636 = vmatprep.subr.bf16.mxu0 %v2116_v5 }
  0x6a   :  { %1411 = vmatpush3.bf16.msra.mxu1 %v1773_v16 }
  0x6b   :  { %1637 = vmatpush3.bf16.msra.mxu0 %v2116_v5  ;;  %1412 = vmatprep.subr.bf16.mxu1 %v1774_v18 }
  0x6c   :  { %1638 = vmatprep.subr.bf16.mxu0 %v2119_v6 }
  0x6e   :  { %1413 = vmatpush3.bf16.msra.mxu1 %v1775_v20 }
  0x6f   :  { %1639 = vmatpush3.bf16.msra.mxu0 %v2119_v6  ;;  %1414 = vmatprep.subr.bf16.mxu1 %v1776_v21 }
  0x70   :  { %1640 = vmatprep.subr.bf16.mxu0 %v2122_v9 }
  0x72   :  { %1415 = vmatpush3.bf16.msra.mxu1 %v1777_v22 }
  0x73   :  { %1641 = vmatpush3.bf16.msra.mxu0 %v2122_v9  ;;  %1416 = vmatprep.subr.bf16.mxu1 %v1778_v23 }
  0x74   :  { %1642 = vmatprep.subr.bf16.mxu0 %v2126_v13 }
  0x76   :  { %1417 = vmatpush3.bf16.msra.mxu1 %v1779_v29 }
  0x77   :  { %1643 = vmatpush3.bf16.msra.mxu0 %v2126_v13  ;;  %1418 = vmatprep.subr.bf16.mxu1 %v1780_v30 }
  0x7a   :  { %1645 = vmatmul.mubr.bf16.vlgmr.msra.gmra.mrb[0].mxu0 %v2132_v17  ;;  %1419 = vmatpush3.bf16.msra.mxu1 %v1781_v31 }
  0x7b   :  { %1648 = vmatprep.mubr.bf16.mxu0 %v2134_v19 }
  0x82   :  { %1649 = vmatmul.mubr.bf16.gmra.mrb[4].mxu0 %v2139_v24 }
  0x83   :  { %1652 = vmatprep.mubr.bf16.mxu0 %v2141_v25 }
  0x8a   :  { %1653 = vmatmul.mubr.bf16.gmra.mrb[8].mxu0 %v2145_v26 }
  0x8b   :  { %1656 = vmatprep.mubr.bf16.mxu0 %v2147_v27 }
  0x92   :  { %1657 = vmatmul.mubr.bf16.gmra.mrb[12].mxu0 %v2151_v28 }
  0x93   :  { %1676 = vmatprep.mubr.bf16.mxu0 %v2111_v4 }
 0x14d   :  { %v1646_v32 = vpop.f32.mrb[0].mxu0 }
 0x14e   :  { %v261_v33 = vpop.f32.mrb[1].mxu0 }
 0x14f   :  { %v1647_v34 = vpop.f32.mrb[2].mxu0 }
 0x150   :  { %v325_v35 = vpack.c.bf16 %v1647_v34, %v1646_v32  ;;  %v264_v36 = vpop.f32.mrb[3].mxu0 }
 0x151   :  { %v324_v37 = vpack.c.bf16 %v264_v36, %v261_v33 }
 0x153   :  { %499 = vmatprep.mubr.bf16.mxu1 %v324_v37 }
 0x154   :  { %500 = vmatmul.mubr.bf16.vlgmr.msra.gmra.mrb[0].mxu1 %v2098_v0 }
 0x155   :  { %507 = vmatprep.mubr.bf16.mxu1 %v325_v35  ;;  %v1650_v38 = vpop.f32.mrb[4].mxu0 }
 0x156   :  { %v277_v39 = vpop.f32.mrb[5].mxu0 }
 0x157   :  { %v1651_v40 = vpop.f32.mrb[6].mxu0 }
 0x158   :  { %v327_v41 = vpack.c.bf16 %v1651_v40, %v1650_v38  ;;  %v280_v42 = vpop.f32.mrb[7].mxu0 }
 0x159   :  { %v326_v43 = vpack.c.bf16 %v280_v42, %v277_v39 }
 0x15c   :  { %508 = vmatmul.mubr.bf16.gmra.mrb[4].mxu1 %v2100_v1 }
 0x15d   :  { %515 = vmatprep.mubr.bf16.mxu1 %v326_v43  ;;  %v1654_v44 = vpop.f32.mrb[8].mxu0 }
 0x15e   :  { %v293_v45 = vpop.f32.mrb[9].mxu0 }
 0x15f   :  { %v1655_v46 = vpop.f32.mrb[10].mxu0 }
 0x160   :  { %v329_v47 = vpack.c.bf16 %v1655_v46, %v1654_v44  ;;  %v296_v48 = vpop.f32.mrb[11].mxu0 }
 0x161   :  { %v328_v49 = vpack.c.bf16 %v296_v48, %v293_v45 }
 0x164   :  { %516 = vmatmul.mubr.bf16.gmra.mrb[8].mxu1 %v2105_v2 }
 0x165   :  { %523 = vmatprep.mubr.bf16.mxu1 %v327_v41  ;;  %v1658_v50 = vpop.f32.mrb[12].mxu0 }
 0x166   :  { %v309_v51 = vpop.f32.mrb[13].mxu0 }
 0x167   :  { %v1659_v52 = vpop.f32.mrb[14].mxu0 }
 0x168   :  { %v331_v53 = vpack.c.bf16 %v1659_v52, %v1658_v50  ;;  %v312_v54 = vpop.f32.mrb[15].mxu0 }
 0x169   :  { %v330_v55 = vpack.c.bf16 %v312_v54, %v309_v51 }
 0x16c   :  { %524 = vmatmul.mubr.bf16.gmra.mrb[12].mxu1 %v2108_v3 }
 0x16d   :  { %531 = vmatprep.mubr.bf16.mxu1 %v328_v49 }
 0x174   :  { %532 = vmatmul.mubr.bf16.gmra.mrb[16].mxu1 %v2116_v5 }
 0x175   :  { %539 = vmatprep.mubr.bf16.mxu1 %v329_v47 }
 0x17c   :  { %540 = vmatmul.mubr.bf16.gmra.mrb[20].mxu1 %v2119_v6 }
 0x17d   :  { %547 = vmatprep.mubr.bf16.mxu1 %v330_v55 }
 0x184   :  { %548 = vmatmul.mubr.bf16.gmra.mrb[24].mxu1 %v2122_v9 }
 0x185   :  { %555 = vmatprep.mubr.bf16.mxu1 %v331_v53 }
 0x18c   :  { %556 = vmatmul.mubr.bf16.gmra.mrb[28].mxu1 %v2126_v13 }
 0x18d   :  { %1708 = vmatprep.mubr.bf16.mxu1 %v2111_v4 }
 0x227   :  { %v1420_v56 = vpop.f32.mrb[0].mxu1 }
 0x228   :  { %v1421_v58 = vpop.f32.mrb[1].mxu1 }
 0x229   :  { %v1422_v59 = vadd.f32 %v1421_v58, %v1420_v56  ;;  %v1423_v60 = vpop.f32.mrb[2].mxu1 }
 0x22a   :  { %v1424_v61 = vpop.f32.mrb[3].mxu1 }
 0x22b   :  { %v502_v62 = vadd.f32 %v1422_v59, %v2167_v57  ;;  %v1425_v63 = vadd.f32 %v1424_v61, %v1423_v60 }
 0x22d   :  { %v505_v0 = vadd.f32 %v1425_v63, %v2167_v57  ;;  %v564_v1 = vmax.f32 %v502_v62, 0.0 }
 0x22f   :  { %v565_v2 = vmax.f32 %v505_v0, 0.0  ;;  %v1426_v3 = vpop.f32.mrb[4].mxu1 }
 0x230   :  { %v1427_v5 = vpop.f32.mrb[5].mxu1 }
 0x231   :  { %v1428_v4 = vadd.f32 %v1427_v5, %v1426_v3  ;;  %v1429_v6 = vpop.f32.mrb[6].mxu1  ;;  %v2171_v7 = vpack.c.bf16 %v565_v2, %v564_v1 }
 0x232   :  { %v1430_v8 = vpop.f32.mrb[7].mxu1 }
 0x233   :  { %v510_v9 = vadd.f32 %v1428_v4, %v2167_v57  ;;  %v1431_v10 = vadd.f32 %v1430_v8, %v1429_v6  ;;  %1660 = vmatprep.subr.bf16.mxu0 %v2171_v7 }
 0x234   :  { %1661 = vmatpush3.bf16.msra.mxu0 %v2171_v7 }
 0x235   :  { %v513_v11 = vadd.f32 %v1431_v10, %v2167_v57  ;;  %v566_v12 = vmax.f32 %v510_v9, 0.0 }
 0x237   :  { %v567_v13 = vmax.f32 %v513_v11, 0.0  ;;  %v1432_v14 = vpop.f32.mrb[8].mxu1 }
 0x238   :  { %v1433_v15 = vpop.f32.mrb[9].mxu1 }
 0x239   :  { %v1434_v16 = vadd.f32 %v1433_v15, %v1432_v14  ;;  %v1435_v18 = vpop.f32.mrb[10].mxu1  ;;  %v2177_v20 = vpack.c.bf16 %v567_v13, %v566_v12 }
 0x23a   :  { %v1436_v21 = vpop.f32.mrb[11].mxu1 }
 0x23b   :  { %v518_v22 = vadd.f32 %v1434_v16, %v2167_v57  ;;  %v1437_v23 = vadd.f32 %v1436_v21, %v1435_v18  ;;  %1662 = vmatprep.subr.bf16.mxu0 %v2177_v20 }
 0x23c   :  { %1663 = vmatpush3.bf16.msra.mxu0 %v2177_v20 }
 0x23d   :  { %v521_v29 = vadd.f32 %v1437_v23, %v2167_v57  ;;  %v568_v30 = vmax.f32 %v518_v22, 0.0 }
 0x23f   :  { %v569_v31 = vmax.f32 %v521_v29, 0.0  ;;  %v1438_v32 = vpop.f32.mrb[12].mxu1 }
 0x240   :  { %v1439_v33 = vpop.f32.mrb[13].mxu1 }
 0x241   :  { %v1440_v34 = vadd.f32 %v1439_v33, %v1438_v32  ;;  %v1441_v35 = vpop.f32.mrb[14].mxu1  ;;  %v2183_v36 = vpack.c.bf16 %v569_v31, %v568_v30 }
 0x242   :  { %v1442_v37 = vpop.f32.mrb[15].mxu1 }
 0x243   :  { %v526_v38 = vadd.f32 %v1440_v34, %v2167_v57  ;;  %v1443_v39 = vadd.f32 %v1442_v37, %v1441_v35  ;;  %1664 = vmatprep.subr.bf16.mxu0 %v2183_v36  ;;  %v1782_v34 = vld [vmem:[#allocation8 + $0x40] sm:$0xff]   ;;  %v1784_v37 = vld [vmem:[#allocation8 + $0x48] sm:$0xff]  }
 0x244   :  { %1665 = vmatpush3.bf16.msra.mxu0 %v2183_v36  ;;  %v1783_v35 = vld [vmem:[#allocation8] sm:$0xff]  }
 0x245   :  { %v529_v40 = vadd.f32 %v1443_v39, %v2167_v57  ;;  %v570_v41 = vmax.f32 %v526_v38, 0.0  ;;  %v1785_v38 = vld [vmem:[#allocation8 + $0x8] sm:$0xff]   ;;  %v1787_v39 = vld [vmem:[#allocation8 + $0x10] sm:$0xff]  }
 0x247   :  { %v571_v42 = vmax.f32 %v529_v40, 0.0  ;;  %v1444_v43 = vpop.f32.mrb[16].mxu1  ;;  %v1788_v40 = vld [vmem:[#allocation8 + $0x58] sm:$0xff]  }
 0x248   :  { %v1445_v44 = vpop.f32.mrb[17].mxu1 }
 0x249   :  { %v1446_v45 = vadd.f32 %v1445_v44, %v1444_v43  ;;  %v1447_v46 = vpop.f32.mrb[18].mxu1  ;;  %v2189_v47 = vpack.c.bf16 %v571_v42, %v570_v41  ;;  %v1789_v41 = vld [vmem:[#allocation8 + $0x18] sm:$0xff]   ;;  %v1790_v42 = vld [vmem:[#allocation8 + $0x60] sm:$0xff]   ;;  %v1792_v44 = vld [vmem:[#allocation8 + $0x68] sm:$0xff]  }
 0x24a   :  { %v1448_v48 = vpop.f32.mrb[19].mxu1  ;;  %v1791_v43 = vld [vmem:[#allocation8 + $0x20] sm:$0xff]  }
 0x24b   :  { %v534_v49 = vadd.f32 %v1446_v45, %v2167_v57  ;;  %v1449_v50 = vadd.f32 %v1448_v48, %v1447_v46  ;;  %1666 = vmatprep.subr.bf16.mxu0 %v2189_v47  ;;  %v1793_v45 = vld [vmem:[#allocation8 + $0x28] sm:$0xff]   ;;  %v1794_v46 = vld [vmem:[#allocation8 + $0x70] sm:$0xff]  }
 0x24c   :  { %1667 = vmatpush3.bf16.msra.mxu0 %v2189_v47  ;;  %v1795_v48 = vld [vmem:[#allocation8 + $0x30] sm:$0xff]  }
 0x24d   :  { %v537_v51 = vadd.f32 %v1449_v50, %v2167_v57  ;;  %v572_v52 = vmax.f32 %v534_v49, 0.0  ;;  %v1796_v49 = vld [vmem:[#allocation8 + $0x78] sm:$0xff]  }
 0x24e   :  { %v1797_v50 = vld [vmem:[#allocation8 + $0x38] sm:$0xff]  }
 0x24f   :  { %v573_v53 = vmax.f32 %v537_v51, 0.0  ;;  %v1450_v54 = vpop.f32.mrb[20].mxu1 }
 0x250   :  { %v1451_v55 = vpop.f32.mrb[21].mxu1 }
 0x251   :  { %v1452_v56 = vadd.f32 %v1451_v55, %v1450_v54  ;;  %v1453_v58 = vpop.f32.mrb[22].mxu1  ;;  %v2195_v59 = vpack.c.bf16 %v573_v53, %v572_v52 }
 0x252   :  { %v1454_v60 = vpop.f32.mrb[23].mxu1 }
 0x253   :  { %v542_v61 = vadd.f32 %v1452_v56, %v2167_v57  ;;  %v1455_v62 = vadd.f32 %v1454_v60, %v1453_v58  ;;  %1668 = vmatprep.subr.bf16.mxu0 %v2195_v59 }
 0x254   :  { %1669 = vmatpush3.bf16.msra.mxu0 %v2195_v59 }
 0x255   :  { %v545_v63 = vadd.f32 %v1455_v62, %v2167_v57  ;;  %v574_v0 = vmax.f32 %v542_v61, 0.0 }
 0x257   :  { %v575_v1 = vmax.f32 %v545_v63, 0.0  ;;  %v1456_v2 = vpop.f32.mrb[24].mxu1 }
 0x258   :  { %v1457_v3 = vpop.f32.mrb[25].mxu1 }
 0x259   :  { %v1458_v5 = vadd.f32 %v1457_v3, %v1456_v2  ;;  %v1459_v4 = vpop.f32.mrb[26].mxu1  ;;  %v2201_v6 = vpack.c.bf16 %v575_v1, %v574_v0 }
 0x25a   :  { %v1460_v8 = vpop.f32.mrb[27].mxu1 }
 0x25b   :  { %v550_v9 = vadd.f32 %v1458_v5, %v2167_v57  ;;  %v1461_v10 = vadd.f32 %v1460_v8, %v1459_v4  ;;  %1670 = vmatprep.subr.bf16.mxu0 %v2201_v6 }
 0x25c   :  { %1671 = vmatpush3.bf16.msra.mxu0 %v2201_v6 }
 0x25d   :  { %v553_v11 = vadd.f32 %v1461_v10, %v2167_v57  ;;  %v576_v12 = vmax.f32 %v550_v9, 0.0 }
 0x25f   :  { %v577_v13 = vmax.f32 %v553_v11, 0.0  ;;  %v1462_v14 = vpop.f32.mrb[28].mxu1 }
 0x260   :  { %v1463_v15 = vpop.f32.mrb[29].mxu1 }
 0x261   :  { %v1464_v16 = vadd.f32 %v1463_v15, %v1462_v14  ;;  %v1465_v18 = vpop.f32.mrb[30].mxu1  ;;  %v2207_v21 = vpack.c.bf16 %v577_v13, %v576_v12  ;;  %v2236_v14 = vld [vmem:[#allocation10 + $0x48] sm:$0xff]   ;;  %v2249_v15 = vld [vmem:[#allocation10 + $0x58] sm:$0xff]  }
 0x262   :  { %v1466_v22 = vpop.f32.mrb[31].mxu1 }
 0x263   :  { %v558_v23 = vadd.f32 %v1464_v16, %v2167_v57  ;;  %v1467_v29 = vadd.f32 %v1466_v22, %v1465_v18  ;;  %1672 = vmatprep.subr.bf16.mxu0 %v2207_v21  ;;  %v2252_v16 = vld [vmem:[#allocation10 + $0x18] sm:$0xff]   ;;  %v2255_v18 = vld [vmem:[#allocation10 + $0x60] sm:$0xff]   ;;  %v2261_v22 = vld [vmem:[#allocation10 + $0x68] sm:$0xff]  }
 0x264   :  { %1673 = vmatpush3.bf16.msra.mxu0 %v2207_v21 }
 0x265   :  { %v561_v30 = vadd.f32 %v1467_v29, %v2167_v57  ;;  %v578_v31 = vmax.f32 %v558_v23, 0.0  ;;  %v1786_v57 = vld [vmem:[#allocation8 + $0x50] sm:$0xff]   ;;  %v2264_v23 = vld [vmem:[#allocation10 + $0x28] sm:$0xff]  }
 0x266   :  { %v2267_v29 = vld [vmem:[#allocation10 + $0x70] sm:$0xff]  }
 0x267   :  { %v579_v32 = vmax.f32 %v561_v30, 0.0 }
 0x269   :  { %v2213_v33 = vpack.c.bf16 %v579_v32, %v578_v31  ;;  %v2274_v31 = vld [vmem:[%s2390_s5] ss:$0 sm:$0xff] }
 0x26b   :  { %1674 = vmatprep.subr.bf16.mxu0 %v2213_v33 }
 0x26c   :  { %1675 = vmatpush3.bf16.msra.mxu0 %v2213_v33 }
 0x26d   :  { %1484 = vmatprep.subr.bf16.mxu0 %v1782_v34 }
 0x26f   :  { %1677 = vmatmul.mubr.bf16.vlgmr.msra.gmra.mrb[16].mxu0 %v2132_v17 }
 0x270   :  { %1680 = vmatprep.mubr.bf16.mxu0 %v2134_v19  ;;  %1485 = vmatpush3.bf16.msra.mxu0 %v1783_v35 }
 0x271   :  { %1486 = vmatprep.subr.bf16.mxu0 %v1784_v37 }
 0x274   :  { %1487 = vmatpush3.bf16.msra.mxu0 %v1785_v38 }
 0x275   :  { %1488 = vmatprep.subr.bf16.mxu0 %v1786_v57 }
 0x277   :  { %1681 = vmatmul.mubr.bf16.gmra.mrb[20].mxu0 %v2139_v24 }
 0x278   :  { %1684 = vmatprep.mubr.bf16.mxu0 %v2141_v25  ;;  %1489 = vmatpush3.bf16.msra.mxu0 %v1787_v39 }
 0x279   :  { %1490 = vmatprep.subr.bf16.mxu0 %v1788_v40 }
 0x27c   :  { %1491 = vmatpush3.bf16.msra.mxu0 %v1789_v41 }
 0x27d   :  { %1492 = vmatprep.subr.bf16.mxu0 %v1790_v42 }
 0x27f   :  { %1685 = vmatmul.mubr.bf16.gmra.mrb[24].mxu0 %v2145_v26 }
 0x280   :  { %1688 = vmatprep.mubr.bf16.mxu0 %v2147_v27  ;;  %1493 = vmatpush3.bf16.msra.mxu0 %v1791_v43 }
 0x281   :  { %1494 = vmatprep.subr.bf16.mxu0 %v1792_v44 }
 0x284   :  { %1495 = vmatpush3.bf16.msra.mxu0 %v1793_v45 }
 0x285   :  { %1496 = vmatprep.subr.bf16.mxu0 %v1794_v46 }
 0x287   :  { %1689 = vmatmul.mubr.bf16.gmra.mrb[28].mxu0 %v2151_v28 }
 0x288   :  { %1497 = vmatpush3.bf16.msra.mxu0 %v1795_v48 }
 0x289   :  { %1498 = vmatprep.subr.bf16.mxu0 %v1796_v49 }
 0x28c   :  { %1499 = vmatpush3.bf16.msra.mxu0 %v1797_v50 }
 0x342   :  { %v1678_v51 = vpop.f32.mrb[16].mxu0 }
 0x343   :  { %v622_v52 = vpop.f32.mrb[17].mxu0 }
 0x344   :  { %v1679_v53 = vpop.f32.mrb[18].mxu0 }
 0x345   :  { %v686_v54 = vpack.c.bf16 %v1679_v53, %v1678_v51  ;;  %v625_v55 = vpop.f32.mrb[19].mxu0 }
 0x346   :  { %v685_v56 = vpack.c.bf16 %v625_v55, %v622_v52 }
 0x348   :  { %860 = vmatprep.mubr.bf16.mxu0 %v685_v56 }
 0x349   :  { %861 = vmatmul.mubr.bf16.vlgmr.msra.gmra.mrb[32].mxu0 %v2171_v7 }
 0x34a   :  { %868 = vmatprep.mubr.bf16.mxu0 %v686_v54  ;;  %v1682_v58 = vpop.f32.mrb[20].mxu0 }
 0x34b   :  { %v638_v60 = vpop.f32.mrb[21].mxu0 }
 0x34c   :  { %v1683_v61 = vpop.f32.mrb[22].mxu0 }
 0x34d   :  { %v688_v62 = vpack.c.bf16 %v1683_v61, %v1682_v58  ;;  %v641_v63 = vpop.f32.mrb[23].mxu0 }
 0x34e   :  { %v687_v0 = vpack.c.bf16 %v641_v63, %v638_v60 }
 0x351   :  { %869 = vmatmul.mubr.bf16.gmra.mrb[36].mxu0 %v2177_v20  ;;  %v2232_v20 = vld [vmem:[#allocation10 + $0x40] sm:$0xff]  }
 0x352   :  { %876 = vmatprep.mubr.bf16.mxu0 %v687_v0  ;;  %v1686_v1 = vpop.f32.mrb[24].mxu0  ;;  %1564 = vmatprep.subr.bf16.mxu0 %v2232_v20 }
 0x353   :  { %v654_v2 = vpop.f32.mrb[25].mxu0 }
 0x354   :  { %v1687_v3 = vpop.f32.mrb[26].mxu0 }
 0x355   :  { %v690_v5 = vpack.c.bf16 %v1687_v3, %v1686_v1  ;;  %v657_v4 = vpop.f32.mrb[27].mxu0 }
 0x356   :  { %v689_v8 = vpack.c.bf16 %v657_v4, %v654_v2 }
 0x359   :  { %877 = vmatmul.mubr.bf16.gmra.mrb[40].mxu0 %v2183_v36  ;;  %v2234_v36 = vld [vmem:[#allocation10] sm:$0xff]  }
 0x35a   :  { %884 = vmatprep.mubr.bf16.mxu0 %v688_v62  ;;  %v1690_v7 = vpop.f32.mrb[28].mxu0  ;;  %1565 = vmatpush3.bf16.msra.mxu0 %v2234_v36 }
 0x35b   :  { %v670_v9 = vpop.f32.mrb[29].mxu0  ;;  %1566 = vmatprep.subr.bf16.mxu0 %v2236_v14 }
 0x35c   :  { %v1691_v10 = vpop.f32.mrb[30].mxu0 }
 0x35d   :  { %v692_v11 = vpack.c.bf16 %v1691_v10, %v1690_v7  ;;  %v673_v12 = vpop.f32.mrb[31].mxu0 }
 0x35e   :  { %v691_v13 = vpack.c.bf16 %v673_v12, %v670_v9 }
 0x361   :  { %885 = vmatmul.mubr.bf16.gmra.mrb[44].mxu0 %v2189_v47  ;;  %v2240_v47 = vld [vmem:[#allocation10 + $0x8] sm:$0xff]  }
 0x362   :  { %892 = vmatprep.mubr.bf16.mxu0 %v689_v8  ;;  %1567 = vmatpush3.bf16.msra.mxu0 %v2240_v47 }
 0x369   :  { %893 = vmatmul.mubr.bf16.gmra.mrb[48].mxu0 %v2195_v59  ;;  %v2243_v59 = vld [vmem:[#allocation10 + $0x50] sm:$0xff]  }
 0x36a   :  { %900 = vmatprep.mubr.bf16.mxu0 %v690_v5  ;;  %1568 = vmatprep.subr.bf16.mxu0 %v2243_v59 }
 0x371   :  { %901 = vmatmul.mubr.bf16.gmra.mrb[52].mxu0 %v2201_v6  ;;  %v2246_v6 = vld [vmem:[#allocation10 + $0x10] sm:$0xff]  }
 0x372   :  { %908 = vmatprep.mubr.bf16.mxu0 %v691_v13  ;;  %1569 = vmatpush3.bf16.msra.mxu0 %v2246_v6 }
 0x373   :  { %1570 = vmatprep.subr.bf16.mxu0 %v2249_v15 }
 0x376   :  { %1571 = vmatpush3.bf16.msra.mxu0 %v2252_v16 }
 0x377   :  { %1572 = vmatprep.subr.bf16.mxu0 %v2255_v18 }
 0x379   :  { %909 = vmatmul.mubr.bf16.gmra.mrb[56].mxu0 %v2207_v21  ;;  %v2258_v21 = vld [vmem:[#allocation10 + $0x20] sm:$0xff]  }
 0x37a   :  { %916 = vmatprep.mubr.bf16.mxu0 %v692_v11  ;;  %1573 = vmatpush3.bf16.msra.mxu0 %v2258_v21 }
 0x37b   :  { %1574 = vmatprep.subr.bf16.mxu0 %v2261_v22 }
 0x37e   :  { %1575 = vmatpush3.bf16.msra.mxu0 %v2264_v23 }
 0x37f   :  { %1576 = vmatprep.subr.bf16.mxu0 %v2267_v29 }
 0x381   :  { %917 = vmatmul.mubr.bf16.gmra.mrb[60].mxu0 %v2213_v33 }
 0x41c   :  { %v1500_v30 = vpop.f32.mrb[32].mxu0 }
 0x41d   :  { %v1501_v32 = vpop.f32.mrb[33].mxu0 }
 0x41e   :  { %v1502_v33 = vadd.f32 %v1501_v32, %v1500_v30  ;;  %v1503_v34 = vpop.f32.mrb[34].mxu0 }
 0x41f   :  { %v1504_v35 = vpop.f32.mrb[35].mxu0 }
 0x420   :  { %v863_v37 = vadd.f32 %v1502_v33, %v2274_v31  ;;  %v1505_v38 = vadd.f32 %v1504_v35, %v1503_v34 }
 0x422   :  { %v866_v57 = vadd.f32 %v1505_v38, %v2274_v31  ;;  %v925_v39 = vmax.f32 %v863_v37, 0.0 }
 0x424   :  { %v926_v40 = vmax.f32 %v866_v57, 0.0  ;;  %v1506_v41 = vpop.f32.mrb[36].mxu0 }
 0x425   :  { %v1507_v42 = vpop.f32.mrb[37].mxu0 }
 0x426   :  { %v1508_v43 = vadd.f32 %v1507_v42, %v1506_v41  ;;  %v1509_v44 = vpop.f32.mrb[38].mxu0  ;;  %v2278_v45 = vpack.c.bf16 %v926_v40, %v925_v39 }
 0x427   :  { %v1510_v46 = vpop.f32.mrb[39].mxu0 }
 0x428   :  { %v871_v48 = vadd.f32 %v1508_v43, %v2274_v31  ;;  %v1511_v49 = vadd.f32 %v1510_v46, %v1509_v44  ;;  %1692 = vmatprep.subr.bf16.mxu1 %v2278_v45 }
 0x429   :  { %1693 = vmatpush3.bf16.msra.mxu1 %v2278_v45 }
 0x42a   :  { %v874_v50 = vadd.f32 %v1511_v49, %v2274_v31  ;;  %v927_v51 = vmax.f32 %v871_v48, 0.0 }
 0x42c   :  { %v928_v52 = vmax.f32 %v874_v50, 0.0  ;;  %v1512_v53 = vpop.f32.mrb[40].mxu0 }
 0x42d   :  { %v1513_v54 = vpop.f32.mrb[41].mxu0 }
 0x42e   :  { %v1514_v55 = vadd.f32 %v1513_v54, %v1512_v53  ;;  %v1515_v56 = vpop.f32.mrb[42].mxu0  ;;  %v2284_v58 = vpack.c.bf16 %v928_v52, %v927_v51 }
 0x42f   :  { %v1516_v60 = vpop.f32.mrb[43].mxu0 }
 0x430   :  { %v879_v61 = vadd.f32 %v1514_v55, %v2274_v31  ;;  %v1517_v62 = vadd.f32 %v1516_v60, %v1515_v56  ;;  %1694 = vmatprep.subr.bf16.mxu1 %v2284_v58 }
 0x431   :  { %1695 = vmatpush3.bf16.msra.mxu1 %v2284_v58 }
 0x432   :  { %v882_v63 = vadd.f32 %v1517_v62, %v2274_v31  ;;  %v929_v0 = vmax.f32 %v879_v61, 0.0 }
 0x434   :  { %v930_v1 = vmax.f32 %v882_v63, 0.0  ;;  %v1518_v2 = vpop.f32.mrb[44].mxu0 }
 0x435   :  { %v1519_v3 = vpop.f32.mrb[45].mxu0 }
 0x436   :  { %v1520_v5 = vadd.f32 %v1519_v3, %v1518_v2  ;;  %v1521_v4 = vpop.f32.mrb[46].mxu0  ;;  %v2290_v8 = vpack.c.bf16 %v930_v1, %v929_v0 }
 0x437   :  { %v1522_v7 = vpop.f32.mrb[47].mxu0 }
 0x438   :  { %v887_v9 = vadd.f32 %v1520_v5, %v2274_v31  ;;  %v1523_v10 = vadd.f32 %v1522_v7, %v1521_v4  ;;  %1696 = vmatprep.subr.bf16.mxu1 %v2290_v8 }
 0x439   :  { %1697 = vmatpush3.bf16.msra.mxu1 %v2290_v8 }
 0x43a   :  { %v890_v11 = vadd.f32 %v1523_v10, %v2274_v31  ;;  %v931_v12 = vmax.f32 %v887_v9, 0.0 }
 0x43c   :  { %v932_v13 = vmax.f32 %v890_v11, 0.0  ;;  %v1524_v30 = vpop.f32.mrb[48].mxu0 }
 0x43d   :  { %v1525_v32 = vpop.f32.mrb[49].mxu0 }
 0x43e   :  { %v1526_v33 = vadd.f32 %v1525_v32, %v1524_v30  ;;  %v1527_v34 = vpop.f32.mrb[50].mxu0  ;;  %v2296_v35 = vpack.c.bf16 %v932_v13, %v931_v12 }
 0x43f   :  { %v1528_v37 = vpop.f32.mrb[51].mxu0 }
 0x440   :  { %v895_v38 = vadd.f32 %v1526_v33, %v2274_v31  ;;  %v1529_v57 = vadd.f32 %v1528_v37, %v1527_v34  ;;  %1698 = vmatprep.subr.bf16.mxu1 %v2296_v35 }
 0x441   :  { %1699 = vmatpush3.bf16.msra.mxu1 %v2296_v35 }
 0x442   :  { %v898_v39 = vadd.f32 %v1529_v57, %v2274_v31  ;;  %v933_v40 = vmax.f32 %v895_v38, 0.0 }
 0x444   :  { %v934_v41 = vmax.f32 %v898_v39, 0.0  ;;  %v1530_v42 = vpop.f32.mrb[52].mxu0 }
 0x445   :  { %v1531_v43 = vpop.f32.mrb[53].mxu0 }
 0x446   :  { %v1532_v44 = vadd.f32 %v1531_v43, %v1530_v42  ;;  %v1533_v46 = vpop.f32.mrb[54].mxu0  ;;  %v2302_v48 = vpack.c.bf16 %v934_v41, %v933_v40 }
 0x447   :  { %v1534_v49 = vpop.f32.mrb[55].mxu0 }
 0x448   :  { %v903_v50 = vadd.f32 %v1532_v44, %v2274_v31  ;;  %v1535_v51 = vadd.f32 %v1534_v49, %v1533_v46  ;;  %1700 = vmatprep.subr.bf16.mxu1 %v2302_v48 }
 0x449   :  { %1701 = vmatpush3.bf16.msra.mxu1 %v2302_v48 }
 0x44a   :  { %v906_v52 = vadd.f32 %v1535_v51, %v2274_v31  ;;  %v935_v53 = vmax.f32 %v903_v50, 0.0 }
 0x44c   :  { %v936_v54 = vmax.f32 %v906_v52, 0.0  ;;  %v1536_v55 = vpop.f32.mrb[56].mxu0 }
 0x44d   :  { %v1537_v56 = vpop.f32.mrb[57].mxu0 }
 0x44e   :  { %v1538_v60 = vadd.f32 %v1537_v56, %v1536_v55  ;;  %v1539_v61 = vpop.f32.mrb[58].mxu0  ;;  %v2308_v62 = vpack.c.bf16 %v936_v54, %v935_v53 }
 0x44f   :  { %v1540_v63 = vpop.f32.mrb[59].mxu0 }
 0x450   :  { %v911_v0 = vadd.f32 %v1538_v60, %v2274_v31  ;;  %v1541_v1 = vadd.f32 %v1540_v63, %v1539_v61  ;;  %1702 = vmatprep.subr.bf16.mxu1 %v2308_v62 }
 0x451   :  { %1703 = vmatpush3.bf16.msra.mxu1 %v2308_v62 }
 0x452   :  { %v914_v2 = vadd.f32 %v1541_v1, %v2274_v31  ;;  %v937_v3 = vmax.f32 %v911_v0, 0.0 }
 0x454   :  { %v938_v5 = vmax.f32 %v914_v2, 0.0  ;;  %v1542_v4 = vpop.f32.mrb[60].mxu0 }
 0x455   :  { %v1543_v7 = vpop.f32.mrb[61].mxu0 }
 0x456   :  { %v1544_v9 = vadd.f32 %v1543_v7, %v1542_v4  ;;  %v1545_v10 = vpop.f32.mrb[62].mxu0  ;;  %v2314_v11 = vpack.c.bf16 %v938_v5, %v937_v3 }
 0x457   :  { %v1546_v12 = vpop.f32.mrb[63].mxu0 }
 0x458   :  { %v919_v13 = vadd.f32 %v1544_v9, %v2274_v31  ;;  %v1547_v30 = vadd.f32 %v1546_v12, %v1545_v10  ;;  %1704 = vmatprep.subr.bf16.mxu1 %v2314_v11 }
 0x459   :  { %1705 = vmatpush3.bf16.msra.mxu1 %v2314_v11 }
 0x45a   :  { %v922_v32 = vadd.f32 %v1547_v30, %v2274_v31  ;;  %v939_v33 = vmax.f32 %v919_v13, 0.0 }
 0x45c   :  { %v940_v34 = vmax.f32 %v922_v32, 0.0 }
 0x45e   :  { %v2320_v37 = vpack.c.bf16 %v940_v34, %v939_v33 }
 0x460   :  { %1706 = vmatprep.subr.bf16.mxu1 %v2320_v37 }
 0x461   :  { %1707 = vmatpush3.bf16.msra.mxu1 %v2320_v37 }
 0x462   :  { %1724 = vmatprep.subr.bf16.mxu1 %v2232_v20 }
 0x464   :  { %1709 = vmatmul.mubr.bf16.vlgmr.msra.gmra.mrb[32].mxu1 %v2132_v17  ;;  %v1811_v17 = vld [vmem:[#allocation10 + $0x30] sm:$0xff]  }
 0x465   :  { %1712 = vmatprep.mubr.bf16.mxu1 %v2134_v19  ;;  %1732 = vmatpush3.bf16.msra.mxu1 %v2234_v36  ;;  %v1812_v19 = vld [vmem:[#allocation10 + $0x78] sm:$0xff]  }
 0x466   :  { %1725 = vmatprep.subr.bf16.mxu1 %v2236_v14  ;;  %1577 = vmatpush3.bf16.msra.mxu0 %v1811_v17 }
 0x467   :  { %1578 = vmatprep.subr.bf16.mxu0 %v1812_v19 }
 0x469   :  { %1733 = vmatpush3.bf16.msra.mxu1 %v2240_v47 }
 0x46a   :  { %1726 = vmatprep.subr.bf16.mxu1 %v2243_v59 }
 0x46c   :  { %1713 = vmatmul.mubr.bf16.gmra.mrb[36].mxu1 %v2139_v24  ;;  %v1813_v24 = vld [vmem:[#allocation10 + $0x38] sm:$0xff]  }
 0x46d   :  { %1716 = vmatprep.mubr.bf16.mxu1 %v2141_v25  ;;  %1734 = vmatpush3.bf16.msra.mxu1 %v2246_v6 }
 0x46e   :  { %1727 = vmatprep.subr.bf16.mxu1 %v2249_v15  ;;  %1579 = vmatpush3.bf16.msra.mxu0 %v1813_v24 }
 0x471   :  { %1735 = vmatpush3.bf16.msra.mxu1 %v2252_v16 }
 0x472   :  { %1728 = vmatprep.subr.bf16.mxu1 %v2255_v18 }
 0x474   :  { %1717 = vmatmul.mubr.bf16.gmra.mrb[40].mxu1 %v2145_v26 }
 0x475   :  { %1720 = vmatprep.mubr.bf16.mxu1 %v2147_v27  ;;  %1736 = vmatpush3.bf16.msra.mxu1 %v2258_v21 }
 0x476   :  { %1729 = vmatprep.subr.bf16.mxu1 %v2261_v22 }
 0x479   :  { %1737 = vmatpush3.bf16.msra.mxu1 %v2264_v23 }
 0x47a   :  { %1730 = vmatprep.subr.bf16.mxu1 %v2267_v29 }
 0x47c   :  { %1721 = vmatmul.mubr.bf16.gmra.mrb[44].mxu1 %v2151_v28 }
 0x47d   :  { %1738 = vmatpush3.bf16.msra.mxu1 %v1811_v17 }
 0x47e   :  { %1731 = vmatprep.subr.bf16.mxu1 %v1812_v19 }
 0x481   :  { %1739 = vmatpush3.bf16.msra.mxu1 %v1813_v24 }
 0x537   :  { %v1710_v25 = vpop.f32.mrb[32].mxu1 }
 0x538   :  { %v983_v26 = vpop.f32.mrb[33].mxu1 }
 0x539   :  { %v1711_v27 = vpop.f32.mrb[34].mxu1 }
 0x53a   :  { %v1047_v20 = vpack.c.bf16 %v1711_v27, %v1710_v25  ;;  %v986_v36 = vpop.f32.mrb[35].mxu1 }
 0x53b   :  { %v1046_v14 = vpack.c.bf16 %v986_v36, %v983_v26 }
 0x53d   :  { %1221 = vmatprep.mubr.bf16.mxu0 %v1046_v14 }
 0x53e   :  { %1222 = vmatmul.mubr.bf16.vlgmr.msra.gmra.mrb[64].mxu0 %v2278_v45 }
 0x53f   :  { %v1714_v47 = vpop.f32.mrb[36].mxu1  ;;  %1229 = vmatprep.mubr.bf16.mxu0 %v1047_v20 }
 0x540   :  { %v999_v28 = vpop.f32.mrb[37].mxu1 }
 0x541   :  { %v1715_v59 = vpop.f32.mrb[38].mxu1 }
 0x542   :  { %v1049_v6 = vpack.c.bf16 %v1715_v59, %v1714_v47  ;;  %v1002_v15 = vpop.f32.mrb[39].mxu1 }
 0x543   :  { %v1048_v16 = vpack.c.bf16 %v1002_v15, %v999_v28 }
 0x545   :  { %1237 = vmatprep.mubr.bf16.mxu1 %v1048_v16 }
 0x546   :  { %1230 = vmatmul.mubr.bf16.gmra.mrb[68].mxu0 %v2284_v58  ;;  %1238 = vmatmul.mubr.bf16.vlgmr.msra.gmra.mrb[48].mxu1 %v2290_v8  ;;  %v2355_v8 = vld [vmem:[%s2392_s7] ss:$0 sm:$0xff]  ;;  %s1961_s7 = smov [#allocation11]  }
 0x547   :  { %1245 = vmatprep.mubr.bf16.mxu1 %v1049_v6  ;;  %v1718_v18 = vpop.f32.mrb[40].mxu1  ;;  %s1307_s22 = sshll.u32 %s1961_s7, 4  ;;  %s1308_s22 = int_to_ptr.vmem [resolvable:$true] %s1307_s22 }
 0x548   :  { %v1015_v21 = vpop.f32.mrb[41].mxu1  ;;  %s1924_s23 = scalar_lea.vmem %s1308_s22, 2048  ;;  %p1929_p13 = scmp.lt.s32.totalorder %s1308_s22, %s1308_s22 }
 0x549   :  { %v1719_v22 = vpop.f32.mrb[42].mxu1  ;;  %p1925_p12 = scmp.ne.s32.totalorder %s1308_s22, %s1924_s23  ;;  %p1930_p0 = scmp.lt.s32.totalorder %s1924_s23, %s1924_s23 }
 0x54a   :  { %v1051_v23 = vpack.c.bf16 %v1719_v22, %v1718_v18  ;;  %v1018_v29 = vpop.f32.mrb[43].mxu1 }
 0x54b   :  { %v1050_v31 = vpack.c.bf16 %v1018_v29, %v1015_v21  ;;  %p1931_p1 = por %p1930_p0, %p1929_p13 }
 0x54d   :  { %p1932_p2 = pnand %p1931_p1, %p1925_p12 }
 0x54e   :  { %1246 = vmatmul.mubr.bf16.gmra.mrb[52].mxu1 %v2296_v35 }
 0x54f   :  { %1253 = vmatprep.mubr.bf16.mxu1 %v1050_v31  ;;  %v1722_v45 = vpop.f32.mrb[44].mxu1 }
 0x550   :  { %v1031_v38 = vpop.f32.mrb[45].mxu1 }
 0x551   :  { %v1723_v57 = vpop.f32.mrb[46].mxu1 }
 0x552   :  { %v1053_v39 = vpack.c.bf16 %v1723_v57, %v1722_v45  ;;  %v1034_v40 = vpop.f32.mrb[47].mxu1 }
 0x553   :  { %v1052_v41 = vpack.c.bf16 %v1034_v40, %v1031_v38 }
 0x556   :  { %1254 = vmatmul.mubr.bf16.gmra.mrb[56].mxu1 %v2302_v48 }
 0x557   :  { %1261 = vmatprep.mubr.bf16.mxu1 %v1051_v23 }
 0x55e   :  { %1262 = vmatmul.mubr.bf16.gmra.mrb[60].mxu1 %v2308_v62 }
 0x55f   :  { %1269 = vmatprep.mubr.bf16.mxu1 %v1052_v41 }
 0x566   :  { %1270 = vmatmul.mubr.bf16.gmra.mrb[64].mxu1 %v2314_v11 }
 0x567   :  { %1277 = vmatprep.mubr.bf16.mxu1 %v1053_v39 }
 0x56e   :  { %1278 = vmatmul.mubr.bf16.gmra.mrb[68].mxu1 %v2320_v37 }
 0x611   :  { %v1580_v58 = vpop.f32.mrb[64].mxu0 }
 0x612   :  { %v1581_v35 = vpop.f32.mrb[65].mxu0 }
 0x613   :  { %v1582_v42 = vadd.f32 %v1581_v35, %v1580_v58  ;;  %v1583_v43 = vpop.f32.mrb[66].mxu0 }
 0x614   :  { %v1584_v44 = vpop.f32.mrb[67].mxu0 }
 0x615   :  { %v1224_v46 = vadd.f32 %v1582_v42, %v2355_v8  ;;  %v1585_v48 = vadd.f32 %v1584_v44, %v1583_v43 }
 0x617   :  { %1286 = vst [vmem:[#allocation11] sm:$0xff] %v1224_v46  ;;  %v1227_v49 = vadd.f32 %v1585_v48, %v2355_v8 }
 0x619   :  { %1287 = vst [vmem:[#allocation11 + $0x8] sm:$0xff] %v1227_v49  ;;  %v1586_v50 = vpop.f32.mrb[68].mxu0  ;;  %v1592_v51 = vpop.f32.mrb[48].mxu1 }
 0x61a   :  { %v1587_v52 = vpop.f32.mrb[69].mxu0  ;;  %v1593_v53 = vpop.f32.mrb[49].mxu1 }
 0x61b   :  { %v1588_v54 = vadd.f32 %v1587_v52, %v1586_v50  ;;  %v1594_v55 = vadd.f32 %v1593_v53, %v1592_v51  ;;  %v1589_v56 = vpop.f32.mrb[70].mxu0  ;;  %v1595_v60 = vpop.f32.mrb[50].mxu1 }
 0x61c   :  { %v1590_v61 = vpop.f32.mrb[71].mxu0  ;;  %v1596_v62 = vpop.f32.mrb[51].mxu1 }
 0x61d   :  { %v1232_v63 = vadd.f32 %v1588_v54, %v2355_v8  ;;  %v1240_v0 = vadd.f32 %v1594_v55, %v2355_v8  ;;  %v1591_v1 = vadd.f32 %v1590_v61, %v1589_v56  ;;  %v1597_v2 = vadd.f32 %v1596_v62, %v1595_v60 }
 0x61f   :  { %1288 = vst [vmem:[#allocation11 + $0x10] sm:$0xff] %v1232_v63  ;;  %1290 = vst [vmem:[#allocation11 + $0x20] sm:$0xff] %v1240_v0  ;;  %v1235_v3 = vadd.f32 %v1591_v1, %v2355_v8  ;;  %v1243_v5 = vadd.f32 %v1597_v2, %v2355_v8 }
 0x621   :  { %1289 = vst [vmem:[#allocation11 + $0x18] sm:$0xff] %v1235_v3  ;;  %1291 = vst [vmem:[#allocation11 + $0x28] sm:$0xff] %v1243_v5  ;;  %v1598_v4 = vpop.f32.mrb[52].mxu1 }
 0x622   :  { %v1599_v7 = vpop.f32.mrb[53].mxu1 }
 0x623   :  { %v1600_v9 = vadd.f32 %v1599_v7, %v1598_v4  ;;  %v1601_v10 = vpop.f32.mrb[54].mxu1 }
 0x624   :  { %v1602_v11 = vpop.f32.mrb[55].mxu1 }
 0x625   :  { %v1248_v12 = vadd.f32 %v1600_v9, %v2355_v8  ;;  %v1603_v13 = vadd.f32 %v1602_v11, %v1601_v10 }
 0x627   :  { %1292 = vst [vmem:[#allocation11 + $0x30] sm:$0xff] %v1248_v12  ;;  %v1251_v30 = vadd.f32 %v1603_v13, %v2355_v8 }
 0x629   :  { %1293 = vst [vmem:[#allocation11 + $0x38] sm:$0xff] %v1251_v30  ;;  %v1604_v32 = vpop.f32.mrb[56].mxu1 }
 0x62a   :  { %v1605_v33 = vpop.f32.mrb[57].mxu1 }
 0x62b   :  { %v1606_v34 = vadd.f32 %v1605_v33, %v1604_v32  ;;  %v1607_v37 = vpop.f32.mrb[58].mxu1 }
 0x62c   :  { %v1608_v17 = vpop.f32.mrb[59].mxu1 }
 0x62d   :  { %v1256_v19 = vadd.f32 %v1606_v34, %v2355_v8  ;;  %v1609_v24 = vadd.f32 %v1608_v17, %v1607_v37 }
 0x62f   :  { %1294 = vst [vmem:[#allocation11 + $0x40] sm:$0xff] %v1256_v19  ;;  %v1259_v25 = vadd.f32 %v1609_v24, %v2355_v8 }
 0x631   :  { %1295 = vst [vmem:[#allocation11 + $0x48] sm:$0xff] %v1259_v25  ;;  %v1610_v26 = vpop.f32.mrb[60].mxu1 }
 0x632   :  { %v1611_v27 = vpop.f32.mrb[61].mxu1 }
 0x633   :  { %v1612_v20 = vadd.f32 %v1611_v27, %v1610_v26  ;;  %v1613_v36 = vpop.f32.mrb[62].mxu1 }
 0x634   :  { %v1614_v14 = vpop.f32.mrb[63].mxu1 }
 0x635   :  { %v1264_v47 = vadd.f32 %v1612_v20, %v2355_v8  ;;  %v1615_v28 = vadd.f32 %v1614_v14, %v1613_v36 }
 0x637   :  { %1296 = vst [vmem:[#allocation11 + $0x50] sm:$0xff] %v1264_v47  ;;  %v1267_v59 = vadd.f32 %v1615_v28, %v2355_v8 }
 0x639   :  { %1297 = vst [vmem:[#allocation11 + $0x58] sm:$0xff] %v1267_v59  ;;  %v1616_v6 = vpop.f32.mrb[64].mxu1 }
 0x63a   :  { %v1617_v15 = vpop.f32.mrb[65].mxu1 }
 0x63b   :  { %v1618_v16 = vadd.f32 %v1617_v15, %v1616_v6  ;;  %v1619_v18 = vpop.f32.mrb[66].mxu1 }
 0x63c   :  { %v1620_v21 = vpop.f32.mrb[67].mxu1 }
 0x63d   :  { %v1272_v22 = vadd.f32 %v1618_v16, %v2355_v8  ;;  %v1621_v23 = vadd.f32 %v1620_v21, %v1619_v18 }
 0x63f   :  { %1298 = vst [vmem:[#allocation11 + $0x60] sm:$0xff] %v1272_v22  ;;  %v1275_v29 = vadd.f32 %v1621_v23, %v2355_v8 }
 0x641   :  { %1299 = vst [vmem:[#allocation11 + $0x68] sm:$0xff] %v1275_v29  ;;  %v1622_v31 = vpop.f32.mrb[68].mxu1 }
 0x642   :  { %v1623_v45 = vpop.f32.mrb[69].mxu1 }
 0x643   :  { %v1624_v38 = vadd.f32 %v1623_v45, %v1622_v31  ;;  %v1625_v57 = vpop.f32.mrb[70].mxu1 }
 0x644   :  { %v1626_v39 = vpop.f32.mrb[71].mxu1 }
 0x645   :  { %v1280_v40 = vadd.f32 %v1624_v38, %v2355_v8  ;;  %v1627_v41 = vadd.f32 %v1626_v39, %v1625_v57 }
 0x647   :  { %1300 = vst [vmem:[#allocation11 + $0x70] sm:$0xff] %v1280_v40  ;;  %v1283_v58 = vadd.f32 %v1627_v41, %v2355_v8 }
 0x649   :  { %1301 = vst [vmem:[#allocation11 + $0x78] sm:$0xff] %v1283_v58 }
 0x64a   :  { %1935 = shalt.err (!%p1932_p2)
}
 0x64b   :  { %s1936_s26 = scalar_lea.hbm %s2393_s8, 2048 }
 0x64c   :  { %p1937_p3 = scmp.ne.s32.totalorder %s2393_s8, %s1936_s26  ;;  %p1940_p4 = scmp.lt.u32.totalorder %s1936_s26, %s2393_s8 }
 0x64e   :  { %p1942_p5 = pnand %p1940_p4, %p1937_p3 }
 0x650   :  { %1945 = shalt.err (!%p1942_p5)
}
 0x651   :  { %s1962_s0 = smov 128   ;;  %s1963_s9 = smov 8  }
 0x652   :  { %1313 = dma.vmem_to_hbm [thread:$0]  %s1308_s22, 2048, %s2393_s8, [#allocation4], %s1962_s0, %s1962_s0, %s1963_s9  }
 0x653   :  { %1952 = dma.done.wait [#allocation4], 2048  }
 0x654   :  { %1953 = vsyncadd [#allocation4], 4294965248 }
 0x655   :  { %1317 = vsyncpa [#allocation3], 1 }
 0x656   :  { %1318 = vsyncpa [#allocation6], 1 }
 0x657   :  { %1319 = vsyncpa [#allocation9], 1 }
 0x658   :  { %1320 = vsyncpa [#allocation4], 1 }

</bundles_post_ra>
